<compile_context>
chip_gen: v7x
topology: tpu7x:2x2x1
jax: 0.10.0
libtpu: 0.0.40
codegen_flags: <defaults>
</compile_context>

<pallas_src>
import functools
import math

import jax
import jax.numpy as jnp
from jax.experimental import pallas as pl
from jax.experimental.pallas import tpu as pltpu


def _encoder_layer_kernel(x_ref, mask_ref, wqkvc_ref, pslab_ref, w1_ref, b1_ref,
                          w2_ref, o_ref, *, n_head: int, eps: float):
    # x_ref    : (1, L, D)   activations (also the residual source)
    # mask_ref : (1, L, L)   src mask (0 -> masked)
    # wqkvc_ref: (4, D, D)   stacked Wq, Wk, Wv, Wconcat (x @ W layout)
    # pslab_ref: (16, D)     rows: bq, bk, bv, bc, b2, g1, be1, g2, be2, pad...
    # w1_ref   : (D, H), b1_ref: (1, H), w2_ref: (H, D)
    # o_ref    : (1, L, D)
    D = x_ref.shape[2]
    dh = D // n_head
    inv_sqrt_dh = 1.0 / math.sqrt(dh)

    x = x_ref[0]                                   # (L, D), model dtype -> MXU
    mask = mask_ref[0]                             # (L, L)
    pslab = pslab_ref[...].astype(jnp.float32)     # (16, D), one load

    def dense(inp, w, bias_f32):
        # model-dtype operands into the MXU, f32 accumulator, f32 bias row.
        return jnp.dot(inp, w, preferred_element_type=jnp.float32) + bias_f32

    # --- multi-head self-attention --------------------------------------
    q = dense(x, wqkvc_ref[0], pslab[0:1, :])      # (L, D) f32
    k = dense(x, wqkvc_ref[1], pslab[1:2, :])
    v = dense(x, wqkvc_ref[2], pslab[2:3, :])

    neg_big = jnp.float32(-10000.0)
    heads = []
    for h in range(n_head):                        # static unroll over heads
        lo = h * dh
        qs = q[:, lo:lo + dh]
        ks = k[:, lo:lo + dh]
        vs = v[:, lo:lo + dh]
        s = jnp.dot(qs, ks.T, preferred_element_type=jnp.float32) * inv_sqrt_dh
        s = jnp.where(mask == 0, neg_big, s)
        s = s - jnp.max(s, axis=-1, keepdims=True)
        p = jnp.exp(s)
        p = p / jnp.sum(p, axis=-1, keepdims=True)
        heads.append(jnp.dot(p.astype(x.dtype), vs.astype(x.dtype),
                             preferred_element_type=jnp.float32))
    attn = jnp.concatenate(heads, axis=-1)         # (L, D) f32

    attn = dense(attn.astype(x.dtype), wqkvc_ref[3], pslab[3:4, :])

    def layer_norm(z, g, b):
        mean = jnp.mean(z, axis=-1, keepdims=True)
        cen = z - mean
        var = jnp.mean(cen * cen, axis=-1, keepdims=True)   # biased variance
        return g * (cen * jax.lax.rsqrt(var + eps)) + b

    z1 = layer_norm(x.astype(jnp.float32) + attn, pslab[5:6, :], pslab[6:7, :])

    # --- position-wise FFN ----------------------------------------------
    h1 = jnp.maximum(
        dense(z1.astype(x.dtype), w1_ref[...], b1_ref[...].astype(jnp.float32)),
        0.0)
    f = dense(h1.astype(x.dtype), w2_ref[...], pslab[4:5, :])
    z2 = layer_norm(z1 + f, pslab[7:8, :], pslab[8:9, :])

    o_ref[0] = z2.astype(o_ref.dtype)


def _encoder_layer_forward(x, mask, params, *, n_head: int, eps: float):
    B, L, D = x.shape
    H = params["w1"].shape[1]
    kernel = functools.partial(_encoder_layer_kernel, n_head=n_head, eps=eps)
    return pl.pallas_call(
        kernel,
        out_shape=jax.ShapeDtypeStruct((B, L, D), x.dtype),
        grid_spec=pltpu.PrefetchScalarGridSpec(
            num_scalar_prefetch=0,
            grid=(B,),
            in_specs=[
                pl.BlockSpec((1, L, D), lambda b: (b, 0, 0)),   # x
                pl.BlockSpec((1, L, L), lambda b: (b, 0, 0)),   # src mask
                pl.BlockSpec((4, D, D), lambda b: (0, 0, 0)),   # Wq/Wk/Wv/Wc
                pl.BlockSpec((16, D), lambda b: (0, 0)),        # packed vectors
                pl.BlockSpec((D, H), lambda b: (0, 0)),         # W1
                pl.BlockSpec((1, H), lambda b: (0, 0)),         # b1
                pl.BlockSpec((H, D), lambda b: (0, 0)),         # W2
            ],
            out_specs=pl.BlockSpec((1, L, D), lambda b: (b, 0, 0)),
        ),
        compiler_params=pltpu.CompilerParams(
            dimension_semantics=("parallel",)),
    )(x, mask, params["wqkvc"], params["pslab"], params["w1"],
      params["b1"], params["w2"])


def encoder_transformer_forward(x, mask, layer_params, *, n_head: int,
                                eps: float = 1e-12):
    for p in layer_params:
        x = _encoder_layer_forward(x, mask, p, n_head=n_head, eps=eps)
    return x


def pack_layer_params(raw, d_model):
    """Pack raw per-layer parameters into the slabs the kernel expects."""
    rows = [raw["bq"], raw["bk"], raw["bv"], raw["bc"], raw["b2"],
            raw["g1"], raw["be1"], raw["g2"], raw["be2"]]
    pslab = jnp.zeros((16, d_model), dtype=raw["bq"].dtype)
    for i, r in enumerate(rows):
        pslab = pslab.at[i].set(r)
    return {
        "wqkvc": jnp.stack([raw["wq"], raw["wk"], raw["wv"], raw["wc"]], axis=0),
        "pslab": pslab,
        "w1": raw["w1"],
        "b1": raw["b1"].reshape(1, -1),
        "w2": raw["w2"],
    }


def _reference_encoder(x, mask, raw_layers, *, n_head: int, eps: float = 1e-12):
    """Pure-JAX replica of the PyTorch EncoderTransformer forward (eval mode)."""
    def layer_norm(z, g, b):
        mean = jnp.mean(z, axis=-1, keepdims=True)
        var = jnp.mean((z - mean) ** 2, axis=-1, keepdims=True)
        return g * (z - mean) / jnp.sqrt(var + eps) + b

    B, L, D = x.shape
    dh = D // n_head
    for r in raw_layers:
        q = x @ r["wq"] + r["bq"]
        k = x @ r["wk"] + r["bk"]
        v = x @ r["wv"] + r["bv"]
        qh = q.reshape(B, L, n_head, dh).transpose(0, 2, 1, 3)
        kh = k.reshape(B, L, n_head, dh).transpose(0, 2, 1, 3)
        vh = v.reshape(B, L, n_head, dh).transpose(0, 2, 1, 3)
        s = (qh @ kh.transpose(0, 1, 3, 2)) / math.sqrt(dh)
        s = jnp.where(mask[:, None, :, :] == 0, -10000.0, s)
        p = jax.nn.softmax(s, axis=-1)
        o = (p @ vh).transpose(0, 2, 1, 3).reshape(B, L, D)
        o = o @ r["wc"] + r["bc"]
        x = layer_norm(x + o, r["g1"], r["be1"])
        f = jnp.maximum(x @ r["w1"] + r["b1"], 0.0) @ r["w2"] + r["b2"]
        x = layer_norm(x + f, r["g2"], r["be2"])
    return x


if __name__ == "__main__":
    B, L, D, H_FFN, N_HEAD, N_LAYERS = 2, 16, 32, 64, 4, 2
    EPS = 1e-12  # matches the module's custom LayerNorm default

    key = jax.random.PRNGKey(0)
    key, kx = jax.random.split(key)
    x = jax.random.normal(kx, (B, L, D), dtype=jnp.float32)

    # Padding-style src mask: batch 0 attends to all 16 keys, batch 1 to 12.
    valid = jnp.array([16, 12])
    col = jnp.arange(L)[None, None, :]                         # (1, 1, L)
    mask = (col < valid[:, None, None]).astype(jnp.float32)    # (B, 1, L)
    mask = jnp.broadcast_to(mask, (B, L, L))

    raw_layers = []
    for _ in range(N_LAYERS):
        key, *ks = jax.random.split(key, 13)
        scale = 0.1
        raw = {
            "wq": jax.random.normal(ks[0], (D, D), jnp.float32) * scale,
            "bq": jax.random.normal(ks[1], (D,), jnp.float32) * scale,
            "wk": jax.random.normal(ks[2], (D, D), jnp.float32) * scale,
            "bk": jax.random.normal(ks[3], (D,), jnp.float32) * scale,
            "wv": jax.random.normal(ks[4], (D, D), jnp.float32) * scale,
            "bv": jax.random.normal(ks[5], (D,), jnp.float32) * scale,
            "wc": jax.random.normal(ks[6], (D, D), jnp.float32) * scale,
            "bc": jax.random.normal(ks[7], (D,), jnp.float32) * scale,
            "w1": jax.random.normal(ks[8], (D, H_FFN), jnp.float32) * scale,
            "b1": jax.random.normal(ks[9], (H_FFN,), jnp.float32) * scale,
            "w2": jax.random.normal(ks[10], (H_FFN, D), jnp.float32) * scale,
            "b2": jax.random.normal(ks[11], (D,), jnp.float32) * scale,
            "g1": jnp.ones((D,), jnp.float32),
            "be1": jnp.zeros((D,), jnp.float32),
            "g2": jnp.ones((D,), jnp.float32),
            "be2": jnp.zeros((D,), jnp.float32),
        }
        raw_layers.append(raw)

    layer_params = [pack_layer_params(r, D) for r in raw_layers]

    out = encoder_transformer_forward(x, mask, layer_params,
                                      n_head=N_HEAD, eps=EPS)
    out = jax.block_until_ready(out)

    ref = _reference_encoder(x, mask, raw_layers, n_head=N_HEAD, eps=EPS)
    assert jnp.allclose(out, ref, atol=1e-4, rtol=1e-4), "mismatch vs reference"

    print("KERNEL_OK")
</pallas_src>

<mosaic_0001>
module attributes {stable_mosaic.version = 11 : i64} {
  func.func @_encoder_layer_kernel(%arg0: i32, %arg1: memref<1x16x32xf32, #tpu.memory_space<vmem>>, %arg2: memref<1x16x16xf32, #tpu.memory_space<vmem>>, %arg3: memref<4x32x32xf32, #tpu.memory_space<vmem>>, %arg4: memref<16x32xf32, #tpu.memory_space<vmem>>, %arg5: memref<32x64xf32, #tpu.memory_space<vmem>>, %arg6: memref<1x64xf32, #tpu.memory_space<vmem>>, %arg7: memref<64x32xf32, #tpu.memory_space<vmem>>, %arg8: memref<1x16x32xf32, #tpu.memory_space<vmem>>) attributes {dimension_semantics = [#tpu.dimension_semantics<parallel>], iteration_bounds = array<i64: 2>, scalar_prefetch = 0 : i64, scratch_operands = 0 : i64, tpu.core_type = #tpu.core_type<tc>, window_params = [{transform_indices = @transform_0, window_bounds = array<i64: 1, 16, 32>}, {transform_indices = @transform_1, window_bounds = array<i64: 1, 16, 16>}, {pipeline_mode = #tpu.pipeline_mode<synchronous>, transform_indices = @transform_2, window_bounds = array<i64: 4, 32, 32>}, {pipeline_mode = #tpu.pipeline_mode<synchronous>, transform_indices = @transform_3, window_bounds = array<i64: 16, 32>}, {pipeline_mode = #tpu.pipeline_mode<synchronous>, transform_indices = @transform_4, window_bounds = array<i64: 32, 64>}, {pipeline_mode = #tpu.pipeline_mode<synchronous>, transform_indices = @transform_5, window_bounds = array<i64: 1, 64>}, {pipeline_mode = #tpu.pipeline_mode<synchronous>, transform_indices = @transform_6, window_bounds = array<i64: 64, 32>}, {transform_indices = @transform_7, window_bounds = array<i64: 1, 16, 32>}]} {
    %c0 = arith.constant 0 : index
    %c0_0 = arith.constant 0 : index
    %c0_1 = arith.constant 0 : index
    %0 = vector.load %arg1[%c0, %c0_0, %c0_1] : memref<1x16x32xf32, #tpu.memory_space<vmem>>, vector<1x16x32xf32>
    %1 = vector.shape_cast %0 : vector<1x16x32xf32> to vector<16x32xf32>
    %c0_2 = arith.constant 0 : index
    %c0_3 = arith.constant 0 : index
    %c0_4 = arith.constant 0 : index
    %2 = vector.load %arg2[%c0_2, %c0_3, %c0_4] : memref<1x16x16xf32, #tpu.memory_space<vmem>>, vector<1x16x16xf32>
    %3 = vector.shape_cast %2 : vector<1x16x16xf32> to vector<16x16xf32>
    %c0_5 = arith.constant 0 : index
    %c0_6 = arith.constant 0 : index
    %4 = vector.load %arg4[%c0_5, %c0_6] : memref<16x32xf32, #tpu.memory_space<vmem>>, vector<16x32xf32>
    %c0_7 = arith.constant 0 : index
    %c0_8 = arith.constant 0 : index
    %c0_9 = arith.constant 0 : index
    %5 = vector.load %arg3[%c0_7, %c0_8, %c0_9] : memref<4x32x32xf32, #tpu.memory_space<vmem>>, vector<1x32x32xf32>
    %6 = vector.shape_cast %5 : vector<1x32x32xf32> to vector<32x32xf32>
    %7 = vector.extract_strided_slice %4 {offsets = [0, 0], sizes = [1, 32], strides = [1, 1]} : vector<16x32xf32> to vector<1x32xf32>
    %cst = arith.constant dense<0.000000e+00> : vector<16x32xf32>
    %8 = tpu.matmul %1, %6, %cst {dimension_numbers = #tpu.dot_dimension_numbers<[1], [0], [0], [1], [0, 0, 1, 1], [], []>} : vector<16x32xf32>, vector<32x32xf32>, vector<16x32xf32> -> vector<16x32xf32>
    %9 = vector.broadcast %7 : vector<1x32xf32> to vector<16x32xf32>
    %10 = arith.addf %8, %9 : vector<16x32xf32>
    %c1 = arith.constant 1 : index
    %c0_10 = arith.constant 0 : index
    %c0_11 = arith.constant 0 : index
    %11 = vector.load %arg3[%c1, %c0_10, %c0_11] : memref<4x32x32xf32, #tpu.memory_space<vmem>>, vector<1x32x32xf32>
    %12 = vector.shape_cast %11 : vector<1x32x32xf32> to vector<32x32xf32>
    %13 = vector.extract_strided_slice %4 {offsets = [1, 0], sizes = [1, 32], strides = [1, 1]} : vector<16x32xf32> to vector<1x32xf32>
    %cst_12 = arith.constant dense<0.000000e+00> : vector<16x32xf32>
    %14 = tpu.matmul %1, %12, %cst_12 {dimension_numbers = #tpu.dot_dimension_numbers<[1], [0], [0], [1], [0, 0, 1, 1], [], []>} : vector<16x32xf32>, vector<32x32xf32>, vector<16x32xf32> -> vector<16x32xf32>
    %15 = vector.broadcast %13 : vector<1x32xf32> to vector<16x32xf32>
    %16 = arith.addf %14, %15 : vector<16x32xf32>
    %c2 = arith.constant 2 : index
    %c0_13 = arith.constant 0 : index
    %c0_14 = arith.constant 0 : index
    %17 = vector.load %arg3[%c2, %c0_13, %c0_14] : memref<4x32x32xf32, #tpu.memory_space<vmem>>, vector<1x32x32xf32>
    %18 = vector.shape_cast %17 : vector<1x32x32xf32> to vector<32x32xf32>
    %19 = vector.extract_strided_slice %4 {offsets = [2, 0], sizes = [1, 32], strides = [1, 1]} : vector<16x32xf32> to vector<1x32xf32>
    %cst_15 = arith.constant dense<0.000000e+00> : vector<16x32xf32>
    %20 = tpu.matmul %1, %18, %cst_15 {dimension_numbers = #tpu.dot_dimension_numbers<[1], [0], [0], [1], [0, 0, 1, 1], [], []>} : vector<16x32xf32>, vector<32x32xf32>, vector<16x32xf32> -> vector<16x32xf32>
    %21 = vector.broadcast %19 : vector<1x32xf32> to vector<16x32xf32>
    %22 = arith.addf %20, %21 : vector<16x32xf32>
    %23 = vector.extract_strided_slice %10 {offsets = [0, 0], sizes = [16, 8], strides = [1, 1]} : vector<16x32xf32> to vector<16x8xf32>
    %24 = vector.extract_strided_slice %16 {offsets = [0, 0], sizes = [16, 8], strides = [1, 1]} : vector<16x32xf32> to vector<16x8xf32>
    %25 = vector.extract_strided_slice %22 {offsets = [0, 0], sizes = [16, 8], strides = [1, 1]} : vector<16x32xf32> to vector<16x8xf32>
    %26 = tpu.transpose %24, [1, 0] : vector<16x8xf32> -> vector<8x16xf32>
    %cst_16 = arith.constant dense<0.000000e+00> : vector<16x16xf32>
    %27 = tpu.matmul %23, %26, %cst_16 {dimension_numbers = #tpu.dot_dimension_numbers<[1], [0], [0], [1], [0, 0, 1, 1], [], []>} : vector<16x8xf32>, vector<8x16xf32>, vector<16x16xf32> -> vector<16x16xf32>
    %cst_17 = arith.constant 0.353553385 : f32
    %28 = vector.broadcast %cst_17 : f32 to vector<16x16xf32>
    %29 = arith.mulf %27, %28 : vector<16x16xf32>
    %cst_18 = arith.constant 0.000000e+00 : f32
    %30 = vector.broadcast %cst_18 : f32 to vector<16x16xf32>
    %31 = arith.cmpf oeq, %3, %30 : vector<16x16xf32>
    %cst_19 = arith.constant -1.000000e+04 : f32
    %32 = vector.broadcast %cst_19 : f32 to vector<16x16xf32>
    %33 = arith.select %31, %32, %29 : vector<16x16xi1>, vector<16x16xf32>
    %cst_20 = arith.constant dense<0xFF800000> : vector<16xf32>
    %34 = vector.multi_reduction <maximumf>, %33, %cst_20 [1] : vector<16x16xf32> to vector<16xf32>
    %35 = vector.shape_cast %34 : vector<16xf32> to vector<16x1xf32>
    %36 = vector.broadcast %35 : vector<16x1xf32> to vector<16x16xf32>
    %37 = arith.subf %33, %36 : vector<16x16xf32>
    %38 = math.exp %37 : vector<16x16xf32>
    %cst_21 = arith.constant dense<0.000000e+00> : vector<16xf32>
    %39 = vector.multi_reduction <add>, %38, %cst_21 [1] : vector<16x16xf32> to vector<16xf32>
    %40 = vector.shape_cast %39 : vector<16xf32> to vector<16x1xf32>
    %41 = vector.broadcast %40 : vector<16x1xf32> to vector<16x16xf32>
    %42 = arith.divf %38, %41 : vector<16x16xf32>
    %cst_22 = arith.constant dense<0.000000e+00> : vector<16x8xf32>
    %43 = tpu.matmul %42, %25, %cst_22 {dimension_numbers = #tpu.dot_dimension_numbers<[1], [0], [0], [1], [0, 0, 1, 1], [], []>} : vector<16x16xf32>, vector<16x8xf32>, vector<16x8xf32> -> vector<16x8xf32>
    %44 = vector.extract_strided_slice %10 {offsets = [0, 8], sizes = [16, 8], strides = [1, 1]} : vector<16x32xf32> to vector<16x8xf32>
    %45 = vector.extract_strided_slice %16 {offsets = [0, 8], sizes = [16, 8], strides = [1, 1]} : vector<16x32xf32> to vector<16x8xf32>
    %46 = vector.extract_strided_slice %22 {offsets = [0, 8], sizes = [16, 8], strides = [1, 1]} : vector<16x32xf32> to vector<16x8xf32>
    %47 = tpu.transpose %45, [1, 0] : vector<16x8xf32> -> vector<8x16xf32>
    %cst_23 = arith.constant dense<0.000000e+00> : vector<16x16xf32>
    %48 = tpu.matmul %44, %47, %cst_23 {dimension_numbers = #tpu.dot_dimension_numbers<[1], [0], [0], [1], [0, 0, 1, 1], [], []>} : vector<16x8xf32>, vector<8x16xf32>, vector<16x16xf32> -> vector<16x16xf32>
    %cst_24 = arith.constant 0.353553385 : f32
    %49 = vector.broadcast %cst_24 : f32 to vector<16x16xf32>
    %50 = arith.mulf %48, %49 : vector<16x16xf32>
    %cst_25 = arith.constant 0.000000e+00 : f32
    %51 = vector.broadcast %cst_25 : f32 to vector<16x16xf32>
    %52 = arith.cmpf oeq, %3, %51 : vector<16x16xf32>
    %cst_26 = arith.constant -1.000000e+04 : f32
    %53 = vector.broadcast %cst_26 : f32 to vector<16x16xf32>
    %54 = arith.select %52, %53, %50 : vector<16x16xi1>, vector<16x16xf32>
    %cst_27 = arith.constant dense<0xFF800000> : vector<16xf32>
    %55 = vector.multi_reduction <maximumf>, %54, %cst_27 [1] : vector<16x16xf32> to vector<16xf32>
    %56 = vector.shape_cast %55 : vector<16xf32> to vector<16x1xf32>
    %57 = vector.broadcast %56 : vector<16x1xf32> to vector<16x16xf32>
    %58 = arith.subf %54, %57 : vector<16x16xf32>
    %59 = math.exp %58 : vector<16x16xf32>
    %cst_28 = arith.constant dense<0.000000e+00> : vector<16xf32>
    %60 = vector.multi_reduction <add>, %59, %cst_28 [1] : vector<16x16xf32> to vector<16xf32>
    %61 = vector.shape_cast %60 : vector<16xf32> to vector<16x1xf32>
    %62 = vector.broadcast %61 : vector<16x1xf32> to vector<16x16xf32>
    %63 = arith.divf %59, %62 : vector<16x16xf32>
    %cst_29 = arith.constant dense<0.000000e+00> : vector<16x8xf32>
    %64 = tpu.matmul %63, %46, %cst_29 {dimension_numbers = #tpu.dot_dimension_numbers<[1], [0], [0], [1], [0, 0, 1, 1], [], []>} : vector<16x16xf32>, vector<16x8xf32>, vector<16x8xf32> -> vector<16x8xf32>
    %65 = vector.extract_strided_slice %10 {offsets = [0, 16], sizes = [16, 8], strides = [1, 1]} : vector<16x32xf32> to vector<16x8xf32>
    %66 = vector.extract_strided_slice %16 {offsets = [0, 16], sizes = [16, 8], strides = [1, 1]} : vector<16x32xf32> to vector<16x8xf32>
    %67 = vector.extract_strided_slice %22 {offsets = [0, 16], sizes = [16, 8], strides = [1, 1]} : vector<16x32xf32> to vector<16x8xf32>
    %68 = tpu.transpose %66, [1, 0] : vector<16x8xf32> -> vector<8x16xf32>
    %cst_30 = arith.constant dense<0.000000e+00> : vector<16x16xf32>
    %69 = tpu.matmul %65, %68, %cst_30 {dimension_numbers = #tpu.dot_dimension_numbers<[1], [0], [0], [1], [0, 0, 1, 1], [], []>} : vector<16x8xf32>, vector<8x16xf32>, vector<16x16xf32> -> vector<16x16xf32>
    %cst_31 = arith.constant 0.353553385 : f32
    %70 = vector.broadcast %cst_31 : f32 to vector<16x16xf32>
    %71 = arith.mulf %69, %70 : vector<16x16xf32>
    %cst_32 = arith.constant 0.000000e+00 : f32
    %72 = vector.broadcast %cst_32 : f32 to vector<16x16xf32>
    %73 = arith.cmpf oeq, %3, %72 : vector<16x16xf32>
    %cst_33 = arith.constant -1.000000e+04 : f32
    %74 = vector.broadcast %cst_33 : f32 to vector<16x16xf32>
    %75 = arith.select %73, %74, %71 : vector<16x16xi1>, vector<16x16xf32>
    %cst_34 = arith.constant dense<0xFF800000> : vector<16xf32>
    %76 = vector.multi_reduction <maximumf>, %75, %cst_34 [1] : vector<16x16xf32> to vector<16xf32>
    %77 = vector.shape_cast %76 : vector<16xf32> to vector<16x1xf32>
    %78 = vector.broadcast %77 : vector<16x1xf32> to vector<16x16xf32>
    %79 = arith.subf %75, %78 : vector<16x16xf32>
    %80 = math.exp %79 : vector<16x16xf32>
    %cst_35 = arith.constant dense<0.000000e+00> : vector<16xf32>
    %81 = vector.multi_reduction <add>, %80, %cst_35 [1] : vector<16x16xf32> to vector<16xf32>
    %82 = vector.shape_cast %81 : vector<16xf32> to vector<16x1xf32>
    %83 = vector.broadcast %82 : vector<16x1xf32> to vector<16x16xf32>
    %84 = arith.divf %80, %83 : vector<16x16xf32>
    %cst_36 = arith.constant dense<0.000000e+00> : vector<16x8xf32>
    %85 = tpu.matmul %84, %67, %cst_36 {dimension_numbers = #tpu.dot_dimension_numbers<[1], [0], [0], [1], [0, 0, 1, 1], [], []>} : vector<16x16xf32>, vector<16x8xf32>, vector<16x8xf32> -> vector<16x8xf32>
    %86 = vector.extract_strided_slice %10 {offsets = [0, 24], sizes = [16, 8], strides = [1, 1]} : vector<16x32xf32> to vector<16x8xf32>
    %87 = vector.extract_strided_slice %16 {offsets = [0, 24], sizes = [16, 8], strides = [1, 1]} : vector<16x32xf32> to vector<16x8xf32>
    %88 = vector.extract_strided_slice %22 {offsets = [0, 24], sizes = [16, 8], strides = [1, 1]} : vector<16x32xf32> to vector<16x8xf32>
    %89 = tpu.transpose %87, [1, 0] : vector<16x8xf32> -> vector<8x16xf32>
    %cst_37 = arith.constant dense<0.000000e+00> : vector<16x16xf32>
    %90 = tpu.matmul %86, %89, %cst_37 {dimension_numbers = #tpu.dot_dimension_numbers<[1], [0], [0], [1], [0, 0, 1, 1], [], []>} : vector<16x8xf32>, vector<8x16xf32>, vector<16x16xf32> -> vector<16x16xf32>
    %cst_38 = arith.constant 0.353553385 : f32
    %91 = vector.broadcast %cst_38 : f32 to vector<16x16xf32>
    %92 = arith.mulf %90, %91 : vector<16x16xf32>
    %cst_39 = arith.constant 0.000000e+00 : f32
    %93 = vector.broadcast %cst_39 : f32 to vector<16x16xf32>
    %94 = arith.cmpf oeq, %3, %93 : vector<16x16xf32>
    %cst_40 = arith.constant -1.000000e+04 : f32
    %95 = vector.broadcast %cst_40 : f32 to vector<16x16xf32>
    %96 = arith.select %94, %95, %92 : vector<16x16xi1>, vector<16x16xf32>
    %cst_41 = arith.constant dense<0xFF800000> : vector<16xf32>
    %97 = vector.multi_reduction <maximumf>, %96, %cst_41 [1] : vector<16x16xf32> to vector<16xf32>
    %98 = vector.shape_cast %97 : vector<16xf32> to vector<16x1xf32>
    %99 = vector.broadcast %98 : vector<16x1xf32> to vector<16x16xf32>
    %100 = arith.subf %96, %99 : vector<16x16xf32>
    %101 = math.exp %100 : vector<16x16xf32>
    %cst_42 = arith.constant dense<0.000000e+00> : vector<16xf32>
    %102 = vector.multi_reduction <add>, %101, %cst_42 [1] : vector<16x16xf32> to vector<16xf32>
    %103 = vector.shape_cast %102 : vector<16xf32> to vector<16x1xf32>
    %104 = vector.broadcast %103 : vector<16x1xf32> to vector<16x16xf32>
    %105 = arith.divf %101, %104 : vector<16x16xf32>
    %cst_43 = arith.constant dense<0.000000e+00> : vector<16x8xf32>
    %106 = tpu.matmul %105, %88, %cst_43 {dimension_numbers = #tpu.dot_dimension_numbers<[1], [0], [0], [1], [0, 0, 1, 1], [], []>} : vector<16x16xf32>, vector<16x8xf32>, vector<16x8xf32> -> vector<16x8xf32>
    %107 = tpu.concatenate %43, %64, %85, %106 in 1 : vector<16x8xf32>, vector<16x8xf32>, vector<16x8xf32>, vector<16x8xf32> -> vector<16x32xf32>
    %c3 = arith.constant 3 : index
    %c0_44 = arith.constant 0 : index
    %c0_45 = arith.constant 0 : index
    %108 = vector.load %arg3[%c3, %c0_44, %c0_45] : memref<4x32x32xf32, #tpu.memory_space<vmem>>, vector<1x32x32xf32>
    %109 = vector.shape_cast %108 : vector<1x32x32xf32> to vector<32x32xf32>
    %110 = vector.extract_strided_slice %4 {offsets = [3, 0], sizes = [1, 32], strides = [1, 1]} : vector<16x32xf32> to vector<1x32xf32>
    %cst_46 = arith.constant dense<0.000000e+00> : vector<16x32xf32>
    %111 = tpu.matmul %107, %109, %cst_46 {dimension_numbers = #tpu.dot_dimension_numbers<[1], [0], [0], [1], [0, 0, 1, 1], [], []>} : vector<16x32xf32>, vector<32x32xf32>, vector<16x32xf32> -> vector<16x32xf32>
    %112 = vector.broadcast %110 : vector<1x32xf32> to vector<16x32xf32>
    %113 = arith.addf %111, %112 : vector<16x32xf32>
    %114 = arith.addf %1, %113 : vector<16x32xf32>
    %115 = vector.extract_strided_slice %4 {offsets = [5, 0], sizes = [1, 32], strides = [1, 1]} : vector<16x32xf32> to vector<1x32xf32>
    %116 = vector.extract_strided_slice %4 {offsets = [6, 0], sizes = [1, 32], strides = [1, 1]} : vector<16x32xf32> to vector<1x32xf32>
    %cst_47 = arith.constant dense<0.000000e+00> : vector<16xf32>
    %117 = vector.multi_reduction <add>, %114, %cst_47 [1] : vector<16x32xf32> to vector<16xf32>
    %118 = vector.shape_cast %117 : vector<16xf32> to vector<16x1xf32>
    %cst_48 = arith.constant 3.200000e+01 : f32
    %119 = vector.broadcast %cst_48 : f32 to vector<16x1xf32>
    %120 = arith.divf %118, %119 : vector<16x1xf32>
    %121 = vector.broadcast %120 : vector<16x1xf32> to vector<16x32xf32>
    %122 = arith.subf %114, %121 : vector<16x32xf32>
    %123 = arith.mulf %122, %122 : vector<16x32xf32>
    %cst_49 = arith.constant dense<0.000000e+00> : vector<16xf32>
    %124 = vector.multi_reduction <add>, %123, %cst_49 [1] : vector<16x32xf32> to vector<16xf32>
    %125 = vector.shape_cast %124 : vector<16xf32> to vector<16x1xf32>
    %cst_50 = arith.constant 3.200000e+01 : f32
    %126 = vector.broadcast %cst_50 : f32 to vector<16x1xf32>
    %127 = arith.divf %125, %126 : vector<16x1xf32>
    %cst_51 = arith.constant 9.99999996E-13 : f32
    %128 = vector.broadcast %cst_51 : f32 to vector<16x1xf32>
    %129 = arith.addf %127, %128 : vector<16x1xf32>
    %130 = math.rsqrt %129 : vector<16x1xf32>
    %131 = vector.broadcast %130 : vector<16x1xf32> to vector<16x32xf32>
    %132 = arith.mulf %122, %131 : vector<16x32xf32>
    %133 = vector.broadcast %115 : vector<1x32xf32> to vector<16x32xf32>
    %134 = arith.mulf %133, %132 : vector<16x32xf32>
    %135 = vector.broadcast %116 : vector<1x32xf32> to vector<16x32xf32>
    %136 = arith.addf %134, %135 : vector<16x32xf32>
    %c0_52 = arith.constant 0 : index
    %c0_53 = arith.constant 0 : index
    %137 = vector.load %arg5[%c0_52, %c0_53] : memref<32x64xf32, #tpu.memory_space<vmem>>, vector<32x64xf32>
    %c0_54 = arith.constant 0 : index
    %c0_55 = arith.constant 0 : index
    %138 = vector.load %arg6[%c0_54, %c0_55] : memref<1x64xf32, #tpu.memory_space<vmem>>, vector<1x64xf32>
    %cst_56 = arith.constant dense<0.000000e+00> : vector<16x64xf32>
    %139 = tpu.matmul %136, %137, %cst_56 {dimension_numbers = #tpu.dot_dimension_numbers<[1], [0], [0], [1], [0, 0, 1, 1], [], []>} : vector<16x32xf32>, vector<32x64xf32>, vector<16x64xf32> -> vector<16x64xf32>
    %140 = vector.broadcast %138 : vector<1x64xf32> to vector<16x64xf32>
    %141 = arith.addf %139, %140 : vector<16x64xf32>
    %cst_57 = arith.constant 0.000000e+00 : f32
    %142 = vector.broadcast %cst_57 : f32 to vector<16x64xf32>
    %143 = arith.maximumf %141, %142 : vector<16x64xf32>
    %c0_58 = arith.constant 0 : index
    %c0_59 = arith.constant 0 : index
    %144 = vector.load %arg7[%c0_58, %c0_59] : memref<64x32xf32, #tpu.memory_space<vmem>>, vector<64x32xf32>
    %145 = vector.extract_strided_slice %4 {offsets = [4, 0], sizes = [1, 32], strides = [1, 1]} : vector<16x32xf32> to vector<1x32xf32>
    %cst_60 = arith.constant dense<0.000000e+00> : vector<16x32xf32>
    %146 = tpu.matmul %143, %144, %cst_60 {dimension_numbers = #tpu.dot_dimension_numbers<[1], [0], [0], [1], [0, 0, 1, 1], [], []>} : vector<16x64xf32>, vector<64x32xf32>, vector<16x32xf32> -> vector<16x32xf32>
    %147 = vector.broadcast %145 : vector<1x32xf32> to vector<16x32xf32>
    %148 = arith.addf %146, %147 : vector<16x32xf32>
    %149 = arith.addf %136, %148 : vector<16x32xf32>
    %150 = vector.extract_strided_slice %4 {offsets = [7, 0], sizes = [1, 32], strides = [1, 1]} : vector<16x32xf32> to vector<1x32xf32>
    %151 = vector.extract_strided_slice %4 {offsets = [8, 0], sizes = [1, 32], strides = [1, 1]} : vector<16x32xf32> to vector<1x32xf32>
    %cst_61 = arith.constant dense<0.000000e+00> : vector<16xf32>
    %152 = vector.multi_reduction <add>, %149, %cst_61 [1] : vector<16x32xf32> to vector<16xf32>
    %153 = vector.shape_cast %152 : vector<16xf32> to vector<16x1xf32>
    %cst_62 = arith.constant 3.200000e+01 : f32
    %154 = vector.broadcast %cst_62 : f32 to vector<16x1xf32>
    %155 = arith.divf %153, %154 : vector<16x1xf32>
    %156 = vector.broadcast %155 : vector<16x1xf32> to vector<16x32xf32>
    %157 = arith.subf %149, %156 : vector<16x32xf32>
    %158 = arith.mulf %157, %157 : vector<16x32xf32>
    %cst_63 = arith.constant dense<0.000000e+00> : vector<16xf32>
    %159 = vector.multi_reduction <add>, %158, %cst_63 [1] : vector<16x32xf32> to vector<16xf32>
    %160 = vector.shape_cast %159 : vector<16xf32> to vector<16x1xf32>
    %cst_64 = arith.constant 3.200000e+01 : f32
    %161 = vector.broadcast %cst_64 : f32 to vector<16x1xf32>
    %162 = arith.divf %160, %161 : vector<16x1xf32>
    %cst_65 = arith.constant 9.99999996E-13 : f32
    %163 = vector.broadcast %cst_65 : f32 to vector<16x1xf32>
    %164 = arith.addf %162, %163 : vector<16x1xf32>
    %165 = math.rsqrt %164 : vector<16x1xf32>
    %166 = vector.broadcast %165 : vector<16x1xf32> to vector<16x32xf32>
    %167 = arith.mulf %157, %166 : vector<16x32xf32>
    %168 = vector.broadcast %150 : vector<1x32xf32> to vector<16x32xf32>
    %169 = arith.mulf %168, %167 : vector<16x32xf32>
    %170 = vector.broadcast %151 : vector<1x32xf32> to vector<16x32xf32>
    %171 = arith.addf %169, %170 : vector<16x32xf32>
    %c0_66 = arith.constant 0 : index
    %c0_67 = arith.constant 0 : index
    %c0_68 = arith.constant 0 : index
    %172 = vector.load %arg8[%c0_66, %c0_67, %c0_68] : memref<1x16x32xf32, #tpu.memory_space<vmem>>, vector<1x16x32xf32>
    %173 = vector.shape_cast %172 : vector<1x16x32xf32> to vector<16x32xf32>
    %174 = vector.shape_cast %171 : vector<16x32xf32> to vector<1x16x32xf32>
    tpu.vector_store %arg8[%c0_66, %c0_67, %c0_68], %174 {strides = array<i32>} : memref<1x16x32xf32, #tpu.memory_space<vmem>>, vector<1x16x32xf32>,
    return
  }
  func.func @transform_0(%arg0: i32) -> (i32, i32, i32) {
    %c0_i32 = arith.constant 0 : i32
    %c0_i32_0 = arith.constant 0 : i32
    %c0_i32_1 = arith.constant 0 : i32
    return %arg0, %c0_i32, %c0_i32_0 : i32, i32, i32
  }
  func.func @transform_1(%arg0: i32) -> (i32, i32, i32) {
    %c0_i32 = arith.constant 0 : i32
    %c0_i32_0 = arith.constant 0 : i32
    %c0_i32_1 = arith.constant 0 : i32
    return %arg0, %c0_i32, %c0_i32_0 : i32, i32, i32
  }
  func.func @transform_2(%arg0: i32) -> (i32, i32, i32) {
    %c0_i32 = arith.constant 0 : i32
    %c0_i32_0 = arith.constant 0 : i32
    %c0_i32_1 = arith.constant 0 : i32
    %c0_i32_2 = arith.constant 0 : i32
    return %c0_i32, %c0_i32_0, %c0_i32_1 : i32, i32, i32
  }
  func.func @transform_3(%arg0: i32) -> (i32, i32) {
    %c0_i32 = arith.constant 0 : i32
    %c0_i32_0 = arith.constant 0 : i32
    %c0_i32_1 = arith.constant 0 : i32
    return %c0_i32, %c0_i32_0 : i32, i32
  }
  func.func @transform_4(%arg0: i32) -> (i32, i32) {
    %c0_i32 = arith.constant 0 : i32
    %c0_i32_0 = arith.constant 0 : i32
    %c0_i32_1 = arith.constant 0 : i32
    return %c0_i32, %c0_i32_0 : i32, i32
  }
  func.func @transform_5(%arg0: i32) -> (i32, i32) {
    %c0_i32 = arith.constant 0 : i32
    %c0_i32_0 = arith.constant 0 : i32
    %c0_i32_1 = arith.constant 0 : i32
    return %c0_i32, %c0_i32_0 : i32, i32
  }
  func.func @transform_6(%arg0: i32) -> (i32, i32) {
    %c0_i32 = arith.constant 0 : i32
    %c0_i32_0 = arith.constant 0 : i32
    %c0_i32_1 = arith.constant 0 : i32
    return %c0_i32, %c0_i32_0 : i32, i32
  }
  func.func @transform_7(%arg0: i32) -> (i32, i32, i32) {
    %c0_i32 = arith.constant 0 : i32
    %c0_i32_0 = arith.constant 0 : i32
    %c0_i32_1 = arith.constant 0 : i32
    return %arg0, %c0_i32, %c0_i32_0 : i32, i32, i32
  }
}

</mosaic_0001>

<bundles_post_ra>
// kernel: tpu_custom_call.1
= control target key start
LH: loop header
LB: loop body
LE: loop exit
PB: predicated region body
PF: predicated region fallthrough
CT: control target
= control target key end

     0   :  { %12 = vsyncpa [#allocation3], 0  ;;  %s2989_s0 = inlined_call_operand.vmem [shape: f32[2,16,32], index: 0, kind: input, shape index: {}]   ;;  %s2990_s1 = inlined_call_operand.vmem [shape: f32[2,16,16], index: 1, kind: input, shape index: {}]   ;;  %s2991_s2 = inlined_call_operand.hbm [shape: f32[4,32,32], index: 2, kind: input, shape index: {}]   ;;  %s2992_s3 = inlined_call_operand.hbm [shape: f32[16,32], index: 3, kind: input, shape index: {}]   ;;  %s2993_s4 = inlined_call_operand.vmem [shape: f32[32,64], index: 4, kind: input, shape index: {}]   ;;  %s2994_s5 = inlined_call_operand.vmem [shape: f32[1,64], index: 5, kind: input, shape index: {}]   ;;  %s2995_s6 = inlined_call_operand.vmem [shape: f32[64,32], index: 6, kind: input, shape index: {}]   ;;  %s2996_s7 = inlined_call_operand.hbm [shape: f32[2,16,32], index: 7, kind: output, shape index: {}]  }
   0x1   :  { %13 = vsyncpa [#allocation6], 0 }
   0x2   :  { %14 = vsyncpa [#allocation4], 0 }
   0x3   :  { %16 = vsyncpa [#allocation4 + $0x1], 0  ;;  %s2580_s24 = smov 0   ;;  %s2582_s25 = smov 0  }
   0x4   :  { %s2584_s26 = smov 0   ;;  %s2586_s27 = smov 0  }
   0x5 LB: > { %s2601_s28 = sadd.s32 4294967295, %s2526_s27   ;;  %s1905_s29 = sadd.s32 4294967294, %s2526_s27   ;;  %s2526_s27 = sphi %s2586_s27, %s3018_s27   ;;  %s2522_s26 = sphi %s2584_s26, %s3017_s26   ;;  %s2518_s25 = sphi %s2582_s25, %s3016_s25   ;;  %s2514_s24 = sphi %s2580_s24, %s3015_s24  }
   0x6   : > { %s2605_s30 = sadd.s32 1, %s2526_s27   ;;  %s186_s8 = sadd.s32 1, %s2522_s26 }
   0x7   : > { %s183_s9 = ssub.s32 %s2526_s27, %s2605_s30  ;;  %p196_p0 = scmp.ne.s32.totalorder %s2522_s26, %s2518_s25 }
   0x8   : > { %p184_p1 = scmp.eq.s32.totalorder %s183_s9, 0  ;;  %p197_p2 = scmp.eq.s32.totalorder %s2601_s28, 1 }
   0x9   : > { %p202_p3 = scmp.ne.s32.totalorder %s2518_s25, %s2514_s24  ;;  %p203_p4 = scmp.eq.s32.totalorder %s1905_s29, 1 }
   0xa   : > { %s2616_s10 = scalar_select %p184_p1, %s2522_s26, %s186_s8  }
   0xb   : > { %p2618_p5 = por %p197_p2, %p196_p0  ;;  %p2622_p6 = por %p203_p4, %p202_p3 }
   0xc   : > { %3000 = sst [smem:[#allocation11_spill]] %s2616_s10  ;;  %p1906_p7 = scmp.ge.s32.totalorder %s2526_s27, 1 }
   0xd   : > { %s3001_s11 = scalar_select %p2618_p5, 1, 0 }
   0xe   : > { %s3002_s12 = scalar_select %p2622_p6, 1, 0 }
   0xf   : > { %p210_p8 = scmp.lt.s32.totalorder %s2526_s27, 3  ;;  %p2997_p9 = scmp.eq.s32.totalorder %s2601_s28, 0 }
  0x10   : > { %s2528_s14 = smov [#allocation2]   ;;  %s2529_s17 = smov [#allocation5]  }
  0x11   : > { %p2629_p10 = pnand %p1906_p7, %p210_p8  ;;  %s222_s15 = sshll.u32 %s2528_s14, 4  ;;  %s223_s15 = int_to_ptr.vmem [resolvable:$true] %s222_s15 }
  0x12   : > { %s235_s18 = sshll.u32 %s2529_s17, 4  ;;  %s2400_s21 = scalar_lea.hbm %s2991_s2, 2048  ;;  %s2641_s18 = int_to_ptr.vmem [resolvable:$true] %s235_s18 }
  0x13   : > { %s3003_s13 = scalar_select %p2629_p10, 1, 0 }
  0x14   : > { %p2271_p11 = pneg %p2629_p10  ;;  %p2401_p13 = scmp.ne.s32.totalorder %s2991_s2, %s2400_s21 }
  0x15   : > { %p2407_p3 = scmp.lt.u32.totalorder %s2400_s21, %s2991_s2 }
  0x16   : > { %p2637_p12 = pnand %p2997_p9, %p2271_p11 }
  0x18   : > { %p2402_p0 = pneg %p2637_p12 }
  0x1a   : > { %p2403_p1 = pnand %p2402_p0, %p2401_p13 }
  0x1c   : > { %p2404_p2 = pneg %p2403_p1 }
  0x1e   : > { %p2409_p4 = pnand %p2407_p3, %p2404_p2 }
  0x20   : > { %2412 = shalt.err (!%p2409_p4)
}
  0x21   : > { %s2413_s9 = scalar_lea.vmem %s223_s15, 2048  ;;  %p2421_p9 = scmp.lt.s32.totalorder %s223_s15, %s223_s15 }
  0x22   : > { %p2414_p7 = scmp.ne.s32.totalorder %s223_s15, %s2413_s9  ;;  %p2422_p6 = scmp.lt.s32.totalorder %s2413_s9, %s2413_s9 }
  0x24   : > { %p2416_p8 = pnand %p2414_p7, %p2402_p0  ;;  %p2423_p5 = por %p2422_p6, %p2421_p9 }
  0x26   : > { %p2417_p11 = pneg %p2416_p8 }
  0x28   : > { %p2424_p10 = pnand %p2423_p5, %p2417_p11 }
  0x2a   : > { %2427 = shalt.err (!%p2424_p10)
}
  0x2b   : > { %s2530_s14 = smov 128   ;;  %s2531_s17 = smov 8  }
  0x2c   : > { %2274 = dma.hbm_to_vmem [thread:$0]  (!%p2637_p12), %s2991_s2, 2048, %s223_s15, [#allocation3], %s2530_s14, %s2530_s14, %s2531_s17  }
  0x2d   : > { %s2428_s23 = scalar_lea.hbm %s2992_s3, 256 }
  0x2e   : > { %p2429_p13 = scmp.ne.s32.totalorder %s2992_s3, %s2428_s23  ;;  %p2435_p9 = scmp.lt.u32.totalorder %s2428_s23, %s2992_s3 }
  0x30   : > { %p2431_p5 = pnand %p2429_p13, %p2402_p0 }
  0x32   : > { %p2432_p6 = pneg %p2431_p5 }
  0x34   : > { %p2437_p10 = pnand %p2435_p9, %p2432_p6 }
  0x36   : > { %2440 = shalt.err (!%p2437_p10)
}
  0x37   : > { %s2441_s15 = scalar_lea.vmem %s2641_s18, 256  ;;  %p2449_p4 = scmp.lt.s32.totalorder %s2641_s18, %s2641_s18 }
  0x38   : > { %p2442_p1 = scmp.ne.s32.totalorder %s2641_s18, %s2441_s15  ;;  %p2450_p7 = scmp.lt.s32.totalorder %s2441_s15, %s2441_s15 }
  0x3a   : > { %p2444_p2 = pnand %p2442_p1, %p2402_p0  ;;  %p2451_p8 = por %p2450_p7, %p2449_p4 }
  0x3c   : > { %p2445_p3 = pneg %p2444_p2 }
  0x3e   : > { %p2452_p11 = pnand %p2451_p8, %p2445_p3 }
  0x40   : > { %2455 = shalt.err (!%p2452_p11)
}
  0x41   : > { %2277 = dma.hbm_to_vmem [thread:$0]  (!%p2637_p12), %s2992_s3, 256, %s2641_s18, [#allocation6], %s2530_s14, %s2530_s14, %s2531_s17  }
  0x42   : > { %p3005_p13 = scmp.ne.s32.totalorder %s3003_s13, 0 }
  0x43   : > { %p3006_p5 = scmp.eq.s32.totalorder (!%p3005_p13), %s2601_s28, 0 }
  0x44   : > { %276 = sbr.rel (%p3005_p13) target bundleno = 3685 (0xe65), region = 48 }
  0x4b   : > { %2501 = dma.done.wait (%p3006_p5), [#allocation3], 2048   ;;  %p3007_p0 = pmov %p3006_p5 }
  0x4d   : > { %2503 = vsyncadd (%p3007_p0), [#allocation3], 4294965248  ;;  %p3008_p6 = pmov %p3007_p0 }
  0x4e   : > { %p3009_p9 = pmov %p3007_p0 }
  0x4f   : > { %2505 = dma.done.wait (%p3008_p6), [#allocation6], 256  }
  0x50   : > { %2507 = vsyncadd (%p3009_p9), [#allocation6], 4294967040  ;;  %p317_p10 = scmp.lt.s32.totalorder %s2601_s28, 1  ;;  %vm341_vm0 = vcmask 261120   ;;  %v333_v0 = vld [vmem:[#allocation2] sm:$0xff]  ;;  %v334_v1 = vld [vmem:[#allocation2 + $0x8] sm:$0xff]  ;;  %v337_v14 = vlaneseq }
  0x51   : > { %v335_v2 = vld [vmem:[#allocation2 + $0x10] sm:$0xff]  ;;  %v2165_v3 = vpack.c.bf16 %v334_v1, %v333_v0  ;;  %v336_v4 = vld [vmem:[#allocation2 + $0x18] sm:$0xff]  ;;  %v424_v7 = vld [vmem:[#allocation2 + $0x20] sm:$0xff]  ;;  %vm591_vm1 = vcmask 64512   ;;  %s2532_s20 = smov 120   ;;  %vm685_vm4 = vcmask 130048  }
  0x52   : > { %s2702_s16 = scalar_select %p317_p10, %s2601_s28, 1  ;;  %v2169_v6 = vpack.c.bf16 %v336_v4, %v335_v2  ;;  %v425_v8 = vld [vmem:[#allocation2 + $0x28] sm:$0xff]  ;;  %v426_v10 = vld [vmem:[#allocation2 + $0x30] sm:$0xff]  ;;  %v427_v11 = vld [vmem:[#allocation2 + $0x38] sm:$0xff]  ;;  %v2724_v15 = vshrl.u32 %v337_v14, 7  ;;  %vm1431_vm6 = vcmask 195584  }
  0x53   : > { %2166 = vmatprep.subr.bf16.mxu1 %v2165_v3  ;;  %v2173_v9 = vpack.c.bf16 %v425_v8, %v424_v7  ;;  %v2177_v13 = vpack.c.bf16 %v427_v11, %v426_v10  ;;  %v2727_v17 = vld [vmem:[#allocation5] sm:$0xff]  ;;  %vm2744_vm2 = vmpackc.low %vm591_vm1, %vm591_vm1  ;;  %v509_v33 = vld [vmem:[#allocation2 + $0x48] sm:$0xff]  ;;  %s2533_s29 = smov 112   ;;  %s2534_s8 = smov 104   ;;  %vm1671_vm7 = vcmask 523264  }
  0x54   : > { %s1960_s13 = sshll.u32 %s2702_s16, 4  ;;  %2168 = vmatpush3.bf16.msra.mxu1 %v2165_v3  ;;  %v339_v16 = vsub.s32 0, %v2724_v15  ;;  %v430_v22 = vsub.s32 1, %v2724_v15  ;;  %v508_v32 = vld [vmem:[#allocation2 + $0x40] sm:$0xff]  ;;  %v510_v34 = vld [vmem:[#allocation2 + $0x50] sm:$0xff]  ;;  %v511_v36 = vld [vmem:[#allocation2 + $0x58] sm:$0xff] }
  0x55   : > { %s321_s17 = scalar_lea.vmem %s2989_s0, %s1960_s13  ;;  %2170 = vmatprep.subr.bf16.mxu1 %v2169_v6  ;;  %v2181_v35 = vpack.c.bf16 %v509_v33, %v508_v32  ;;  %v2185_v37 = vpack.c.bf16 %v511_v36, %v510_v34  ;;  %s326_s23 = scalar_lea.vmem %s2990_s1, %s1960_s13  ;;  %v514_v10 = vsub.s32 2, %v2724_v15 }
  0x56   : > { %v2710_v5 = vld [vmem:[%s321_s17] sm:$0xff]  ;;  %v2716_v12 = vld [vmem:[%s321_s17 + $0x8] sm:$0xff]  ;;  %v340_v18 = vrot.slane %v2727_v17, %v339_v16  ;;  %v431_v24 = vrot.slane %v2727_v17, %v430_v22  ;;  %s2535_s9 = smov 8   ;;  %s2536_s15 = smov 16  }
  0x57   : > { %2043 = vmatprep.mubr.msk.f32.mxu1 %vm341_vm0, %v2710_v5  ;;  %2065 = vmatprep.mubr.msk.f32.mxu0 %vm341_vm0, %v2710_v5  ;;  %v2773_v44 = vld [vmem:[%s326_s23 + $0x8] sm:$0xff]  ;;  %v2775_v45 = vld [vmem:[%s326_s23] sm:$0xff]  ;;  %v515_v11 = vrot.slane %v2727_v17, %v514_v10  ;;  %s2537_s10 = smov 24   ;;  %s1962_s19 = sshll.u32 %s2601_s28, 8 }
  0x58   : > { %2172 = vmatpush3.bf16.msra.mxu1 %v2169_v6  ;;  %2182 = vmatprep.subr.bf16.mxu0 %v2181_v35  ;;  %vm682_vm3 = vcmp.eq.f32.partialorder %v2773_v44, 0.0  ;;  %vm681_vm5 = vcmp.eq.f32.partialorder %v2775_v45, 0.0  ;;  %s2941_s17 = scalar_lea.hbm %s2996_s7, %s1962_s19  ;;  %p3012_p1 = scmp.ne.s32.totalorder %s3001_s11, 0 }
  0x59   : > { %2174 = vmatprep.subr.bf16.mxu1 %v2173_v9  ;;  %2184 = vmatpush3.bf16.msra.mxu0 %v2181_v35  ;;  %s2538_s21 = smov [#allocation7]  }
  0x5a   : > { %2186 = vmatprep.subr.bf16.mxu0 %v2185_v37  ;;  %s2460_s22 = sshll.u32 %s2538_s21, 4  ;;  %s2461_s22 = int_to_ptr.vmem [resolvable:$false] %s2460_s22 }
  0x5b   : > { %2044 = vmatmul.mubr.msk.f32.vlgmr.msra.gmra.mrb[0].mxu1 %vm341_vm0, %v2716_v12  ;;  %s2462_s23 = scalar_lea.vmem %s2461_s22, 512 }
  0x5c   : > { %2176 = vmatpush3.bf16.msra.mxu1 %v2173_v9  ;;  %2054 = vmatprep.mubr.msk.f32.mxu1 %vm341_vm0, %v2710_v5 }
  0x5d   : > { %2178 = vmatprep.subr.bf16.mxu1 %v2177_v13  ;;  %2188 = vmatpush3.bf16.msra.mxu0 %v2185_v37 }
  0x60   : > { %2180 = vmatpush3.bf16.msra.mxu1 %v2177_v13  ;;  %2066 = vmatmul.mubr.msk.f32.vlgmr.msra.gmra.mrb[0].mxu0 %vm341_vm0, %v2716_v12 }
  0x63   : > { %2055 = vmatmul.mubr.msk.f32.vlgmr.msra.gmra.mrb[2].mxu1 %vm341_vm0, %v2716_v12 }
 0x12e   : > { %v2045_v19 = vpop.f32.mrb[0].mxu1 }
 0x12f   : > { %v2732_v20 = vadd.f32 %v2045_v19, %v340_v18  ;;  %v414_v21 = vpop.f32.mrb[1].mxu1 }
 0x130   : > { %v2735_v23 = vadd.f32 %v414_v21, %v340_v18 }
 0x131   : > { %791 = vrot.lane.b32.xlu1 %v2732_v20, %s2532_s20 }
 0x132   : > { %2072 = vmatprep.mubr.msk.f32.mxu1 %vm591_vm1, %v2735_v23 }
 0x133   : > { %v2067_v4 = vpop.f32.mrb[0].mxu0 }
 0x134   : > { %v588_v13 = vadd.f32 %v2067_v4, %v515_v11  ;;  %v582_v14 = vpop.f32.mrb[1].mxu0 }
 0x135   : > { %v583_v18 = vadd.f32 %v582_v14, %v515_v11 }
 0x136   : > { %v2056_v25 = vpop.f32.mrb[2].mxu1 }
 0x137   : > { %v504_v26 = vadd.f32 %v2056_v25, %v431_v24  ;;  %v498_v27 = vpop.f32.mrb[3].mxu1  ;;  %v2795_v19 = vpack.i.bf16 %v588_v13, %v583_v18  ;;  %v2195_v21 = vpack.c.bf16 %v588_v13, %v583_v18 }
 0x138   : > { %v499_v28 = vadd.f32 %v498_v27, %v431_v24 }
 0x139   : > { %2196 = vmatprep.subr.bf16.mxu0 %v2195_v21 }
 0x13a   : > { %v2748_v30 = vpack.i.bf16 %v504_v26, %v499_v28  ;;  %v2189_v31 = vpack.c.bf16 %v504_v26, %v499_v28  ;;  %2198 = vmatpush3.bf16.msra.mxu0 %v2195_v21 }
 0x13c   : > { %2331 = vrot.lane.b32.xlu0 %v2748_v30, %s2532_s20  ;;  %2191 = vmatprep.subr.msk.bf16.mxu1 %vm2744_vm2, %v2189_v31 }
 0x13d   : > { %2194 = vmatpush3.bf16.xpose.msk.msra.mxu1 %vm2744_vm2, %v2189_v31 }
 0x140   : > { %789 = vrot.lane.b32.xlu0 %v2735_v23, %s2532_s20 }
 0x144   : > { %2073 = vmatmul.mubr.msk.f32.vlgmr.msra.gmra.mrb[4].mxu1 %vm591_vm1, %v2732_v20 }
 0x1a3   : > { %v792_v43 = vpop.permute.xlu1 %791 }
 0x1ae   : > { %v2332_v38 = vpop.permute.xlu0 %2331 }
 0x1af   : > { %v2334_v39 = vunpack.i.h.bf16 %v2332_v38  ;;  %v2333_v40 = vunpack.i.l.bf16 %v2332_v38 }
 0x1b1   : > { %v2199_v41 = vpack.c.bf16 %v2334_v39, %v2333_v40 }
 0x1b2   : > { %v790_v42 = vpop.permute.xlu0 %789 }
 0x1b3   : > { %2201 = vmatprep.subr.msk.bf16.mxu1 %vm2744_vm2, %v2199_v41  ;;  %2086 = vmatprep.mubr.msk.f32.mxu1 %vm591_vm1, %v790_v42 }
 0x1b4   : > { %2204 = vmatpush3.bf16.xpose.msk.msra.mxu1 %vm2744_vm2, %v2199_v41 }
 0x1bb   : > { %2087 = vmatmul.mubr.msk.f32.vlgmr.msra.gmra.mrb[6].mxu1 %vm591_vm1, %v792_v43 }
 0x217   : > { %v2074_v46 = vpop.f32.mrb[4].mxu1 }
 0x218   : > { %v680_v47 = vmul.f32 0.35355338, %v2074_v46  ;;  %v670_v48 = vpop.f32.mrb[5].mxu1 }
 0x219   : > { %v679_v49 = vmul.f32 0.35355338, %v670_v48 }
 0x21a   : > { %v684_v50 = vsel %vm682_vm3, -10000.0, %v680_v47 }
 0x21b   : > { %v689_v51 = vsel %vm685_vm4, %v684_v50, -inf  ;;  %v683_v52 = vsel %vm681_vm5, -10000.0, %v679_v49 }
 0x21c   : > { %690 = vmax.xlane.f32.xlu0 %v689_v51  ;;  %v686_v53 = vsel %vm685_vm4, %v683_v52, -inf }
 0x21d   : > { %687 = vmax.xlane.f32.xlu1 %v686_v53 }
 0x28e   : > { %v2088_v54 = vpop.f32.mrb[6].mxu1 }
 0x28f   : > { %v881_v55 = vmul.f32 0.35355338, %v2088_v54  ;;  %v871_v56 = vpop.f32.mrb[7].mxu1 }
 0x290   : > { %v880_v57 = vmul.f32 0.35355338, %v871_v56 }
 0x291   : > { %v883_v58 = vsel %vm682_vm3, -10000.0, %v881_v55 }
 0x292   : > { %v887_v59 = vsel %vm685_vm4, %v883_v58, -inf  ;;  %v882_v60 = vsel %vm681_vm5, -10000.0, %v880_v57 }
 0x293   : > { %888 = vmax.xlane.f32.xlu1 %v887_v59  ;;  %v884_v61 = vsel %vm685_vm4, %v882_v60, -inf }
 0x294   : > { %885 = vmax.xlane.f32.xlu0 %v884_v61 }
 0x2a9   : > { %v691_v62 = vpop.xlane.xlu0 %690 }
 0x2aa   : > { %v693_v63 = vsub.f32 %v684_v50, %v691_v62  ;;  %v688_v0 = vpop.xlane.xlu1 %687 }
 0x2ab   : > { %v692_v1 = vsub.f32 %v683_v52, %v688_v0 }
 0x2ac   : > { %v696_v2 = vmul.f32 1.442695, %v693_v63 }
 0x2ad   : > { %v694_v3 = vmul.f32 1.442695, %v692_v1 }
 0x2ae   : > { %2360 = vpow2.f32 %v696_v2 }
 0x2af   : > { %2362 = vpow2.f32 %v694_v3 }
 0x2b8   : > { %v2361_v6 = vpop.eup %2360 }
 0x2b9   : > { %v2363_v7 = vpop.eup %2362  ;;  %v701_v8 = vsel %vm685_vm4, %v2361_v6, 0.0 }
 0x2ba   : > { %702 = vadd.xlane.f32.xlu1 %v701_v8  ;;  %v698_v9 = vsel %vm685_vm4, %v2363_v7, 0.0 }
 0x2bb   : > { %699 = vadd.xlane.f32.xlu0 %v698_v9 }
 0x320   : > { %v889_v22 = vpop.xlane.xlu1 %888 }
 0x321   : > { %v891_v24 = vsub.f32 %v883_v58, %v889_v22  ;;  %v886_v25 = vpop.xlane.xlu0 %885 }
 0x322   : > { %v890_v26 = vsub.f32 %v882_v60, %v886_v25 }
 0x323   : > { %v894_v27 = vmul.f32 1.442695, %v891_v24 }
 0x324   : > { %v892_v28 = vmul.f32 1.442695, %v890_v26 }
 0x325   : > { %2364 = vpow2.f32 %v894_v27 }
 0x326   : > { %2366 = vpow2.f32 %v892_v28 }
 0x32f   : > { %v2365_v31 = vpop.eup %2364 }
 0x330   : > { %v2367_v32 = vpop.eup %2366  ;;  %v899_v33 = vsel %vm685_vm4, %v2365_v31, 0.0 }
 0x331   : > { %900 = vadd.xlane.f32.xlu1 %v899_v33  ;;  %v896_v34 = vsel %vm685_vm4, %v2367_v32, 0.0 }
 0x332   : > { %897 = vadd.xlane.f32.xlu0 %v896_v34 }
 0x342   : > { %2341 = vrot.lane.b32.xlu1 %v2748_v30, %s2533_s29 }
 0x346   : > { %995 = vrot.lane.b32.xlu1 %v2735_v23, %s2533_s29 }
 0x347   : > { %v703_v35 = vpop.xlane.xlu1 %702 }
 0x348   : > { %2368 = vrcp.f32 %v703_v35  ;;  %2336 = vrot.lane.b32.xlu0 %v2795_v19, %s2532_s20  ;;  %v700_v36 = vpop.xlane.xlu0 %699 }
 0x349   : > { %2370 = vrcp.f32 %v700_v36 }
 0x34c   : > { %997 = vrot.lane.b32.xlu0 %v2732_v20, %s2533_s29 }
 0x352   : > { %v2369_v37 = vpop.eup %2368 }
 0x353   : > { %v2371_v38 = vpop.eup %2370  ;;  %v707_v40 = vmul.f32 %v2369_v37, %v2361_v6 }
 0x354   : > { %v705_v39 = vmul.f32 %v2371_v38, %v2363_v7 }
 0x356   : > { %2079 = vmatprep.mubr.msk.f32.mxu0 %vm685_vm4, %v705_v39 }
 0x357   : > { %2080 = vmatmul.mubr.msk.f32.vlgmr.msra.gmra.mrb[2].mxu0 %vm685_vm4, %v707_v40 }
 0x3be   : > { %v901_v41 = vpop.xlane.xlu1 %900 }
 0x3bf   : > { %2372 = vrcp.f32 %v901_v41  ;;  %v898_v42 = vpop.xlane.xlu0 %897 }
 0x3c0   : > { %2374 = vrcp.f32 %v898_v42 }
 0x3c2   : > { %v2342_v43 = vpop.permute.xlu1 %2341 }
 0x3c3   : > { %v2337_v46 = vpop.permute.xlu0 %2336  ;;  %v2344_v47 = vunpack.i.h.bf16 %v2342_v43  ;;  %v2343_v48 = vunpack.i.l.bf16 %v2342_v43 }
 0x3c4   : > { %v2339_v49 = vunpack.i.h.bf16 %v2337_v46  ;;  %v2338_v50 = vunpack.i.l.bf16 %v2337_v46 }
 0x3c5   : > { %v2209_v52 = vpack.c.bf16 %v2344_v47, %v2343_v48 }
 0x3c6   : > { %v2205_v51 = vpack.c.bf16 %v2339_v49, %v2338_v50  ;;  %v996_v57 = vpop.permute.xlu1 %995 }
 0x3c7   : > { %v998_v58 = vpop.permute.xlu0 %997 }
 0x3c8   : > { %2206 = vmatprep.subr.bf16.mxu0 %v2205_v51 }
 0x3c9   : > { %v2373_v53 = vpop.eup %2372  ;;  %2208 = vmatpush3.bf16.msra.mxu0 %v2205_v51 }
 0x3ca   : > { %v2375_v54 = vpop.eup %2374  ;;  %2211 = vmatprep.subr.msk.bf16.mxu0 %vm2744_vm2, %v2209_v52  ;;  %v905_v56 = vmul.f32 %v2373_v53, %v2365_v31 }
 0x3cb   : > { %v903_v55 = vmul.f32 %v2375_v54, %v2367_v32 }
 0x3cd   : > { %2093 = vmatprep.mubr.msk.f32.mxu0 %vm685_vm4, %v903_v55 }
 0x3ce   : > { %2094 = vmatmul.mubr.msk.f32.vlgmr.msra.gmra.mrb[4].mxu0 %vm685_vm4, %v905_v56 }
 0x3cf   : > { %2100 = vmatprep.mubr.msk.f32.mxu0 %vm591_vm1, %v996_v57 }
 0x3d2   : > { %2214 = vmatpush3.bf16.xpose.msk.msra.mxu0 %vm2744_vm2, %v2209_v52 }
 0x3d9   : > { %2101 = vmatmul.mubr.msk.f32.vlgmr.msra.gmra.mrb[6].mxu0 %vm591_vm1, %v998_v58 }
 0x42a   : > { %v2817_v59 = vpop.f32.mrb[2].mxu0 }
 0x42b   : > { %v2819_v60 = vpop.f32.mrb[3].mxu0 }
 0x4a1   : > { %v2821_v61 = vpop.f32.mrb[4].mxu0 }
 0x4a2   : > { %v2823_v62 = vpop.f32.mrb[5].mxu0 }
 0x4ac   : > { %v2102_v63 = vpop.f32.mrb[6].mxu0 }
 0x4ad   : > { %v1087_v0 = vmul.f32 0.35355338, %v2102_v63  ;;  %v1077_v1 = vpop.f32.mrb[7].mxu0 }
 0x4ae   : > { %v1086_v2 = vmul.f32 0.35355338, %v1077_v1 }
 0x4af   : > { %v1089_v3 = vsel %vm682_vm3, -10000.0, %v1087_v0 }
 0x4b0   : > { %v1093_v4 = vsel %vm685_vm4, %v1089_v3, -inf  ;;  %v1088_v6 = vsel %vm681_vm5, -10000.0, %v1086_v2 }
 0x4b1   : > { %1094 = vmax.xlane.f32.xlu0 %v1093_v4  ;;  %v1090_v7 = vsel %vm685_vm4, %v1088_v6, -inf }
 0x4b2   : > { %1091 = vmax.xlane.f32.xlu1 %v1090_v7 }
 0x53e   : > { %v1095_v8 = vpop.xlane.xlu0 %1094 }
 0x53f   : > { %v1097_v9 = vsub.f32 %v1089_v3, %v1095_v8  ;;  %v1092_v10 = vpop.xlane.xlu1 %1091  ;;  %v1436_v8 = vld [vmem:[#allocation2 + $0x68] sm:$0xff] }
 0x540   : > { %v1096_v11 = vsub.f32 %v1088_v6, %v1092_v10 }
 0x541   : > { %v1100_v13 = vmul.f32 1.442695, %v1097_v9  ;;  %v1437_v9 = vld [vmem:[#allocation2 + $0x70] sm:$0xff] }
 0x542   : > { %v1098_v14 = vmul.f32 1.442695, %v1096_v11  ;;  %v1438_v11 = vld [vmem:[#allocation2 + $0x78] sm:$0xff] }
 0x543   : > { %2376 = vpow2.f32 %v1100_v13  ;;  %v2233_v13 = vpack.c.bf16 %v1438_v11, %v1437_v9 }
 0x544   : > { %2378 = vpow2.f32 %v1098_v14 }
 0x54d   : > { %v2377_v18 = vpop.eup %2376 }
 0x54e   : > { %v2379_v21 = vpop.eup %2378  ;;  %v1105_v22 = vsel %vm685_vm4, %v2377_v18, 0.0 }
 0x54f   : > { %1106 = vadd.xlane.f32.xlu1 %v1105_v22  ;;  %v1102_v24 = vsel %vm685_vm4, %v2379_v21, 0.0 }
 0x550   : > { %1103 = vadd.xlane.f32.xlu0 %v1102_v24 }
 0x560   : > { %2351 = vrot.lane.b32.xlu1 %v2748_v30, %s2534_s8 }
 0x564   : > { %1199 = vrot.lane.b32.xlu1 %v2735_v23, %s2534_s8 }
 0x566   : > { %2346 = vrot.lane.b32.xlu0 %v2795_v19, %s2533_s29 }
 0x56a   : > { %1201 = vrot.lane.b32.xlu0 %v2732_v20, %s2534_s8 }
 0x5dc   : > { %v1107_v25 = vpop.xlane.xlu1 %1106 }
 0x5dd   : > { %2380 = vrcp.f32 %v1107_v25  ;;  %v1104_v26 = vpop.xlane.xlu0 %1103 }
 0x5de   : > { %2382 = vrcp.f32 %v1104_v26 }
 0x5e0   : > { %v2352_v27 = vpop.permute.xlu1 %2351 }
 0x5e1   : > { %v2347_v28 = vpop.permute.xlu0 %2346  ;;  %v2354_v31 = vunpack.i.h.bf16 %v2352_v27  ;;  %v2353_v32 = vunpack.i.l.bf16 %v2352_v27 }
 0x5e2   : > { %v2349_v33 = vunpack.i.h.bf16 %v2347_v28  ;;  %v2348_v34 = vunpack.i.l.bf16 %v2347_v28 }
 0x5e3   : > { %v2219_v35 = vpack.c.bf16 %v2354_v31, %v2353_v32 }
 0x5e4   : > { %v2215_v30 = vpack.c.bf16 %v2349_v33, %v2348_v34  ;;  %v1200_v38 = vpop.permute.xlu1 %1199 }
 0x5e5   : > { %v1202_v39 = vpop.permute.xlu0 %1201 }
 0x5e6   : > { %2216 = vmatprep.subr.bf16.mxu1 %v2215_v30 }
 0x5e7   : > { %v2381_v23 = vpop.eup %2380  ;;  %2218 = vmatpush3.bf16.msra.mxu1 %v2215_v30 }
 0x5e8   : > { %v2383_v36 = vpop.eup %2382  ;;  %2221 = vmatprep.subr.msk.bf16.mxu1 %vm2744_vm2, %v2219_v35  ;;  %v1111_v37 = vmul.f32 %v2381_v23, %v2377_v18 }
 0x5e9   : > { %v1109_v20 = vmul.f32 %v2383_v36, %v2379_v21 }
 0x5eb   : > { %2107 = vmatprep.mubr.msk.f32.mxu1 %vm685_vm4, %v1109_v20 }
 0x5ec   : > { %2108 = vmatmul.mubr.msk.f32.vlgmr.msra.gmra.mrb[8].mxu1 %vm685_vm4, %v1111_v37 }
 0x5ed   : > { %2114 = vmatprep.mubr.msk.f32.mxu1 %vm591_vm1, %v1200_v38 }
 0x5f0   : > { %2224 = vmatpush3.bf16.xpose.msk.msra.mxu1 %vm2744_vm2, %v2219_v35  ;;  %v1441_v35 = vsub.s32 3, %v2724_v15 }
 0x5f2   : > { %v1442_v23 = vrot.slane %v2727_v17, %v1441_v35 }
 0x5f7   : > { %2115 = vmatmul.mubr.msk.f32.vlgmr.msra.gmra.mrb[10].mxu1 %vm591_vm1, %v1202_v39 }
 0x6bf   : > { %v2109_v40 = vpop.f32.mrb[8].mxu1 }
 0x6c0   : > { %v1190_v41 = vpop.f32.mrb[9].mxu1 }
 0x6ca   : > { %v2116_v42 = vpop.f32.mrb[10].mxu1 }
 0x6cb   : > { %v1291_v43 = vmul.f32 0.35355338, %v2116_v42  ;;  %v1281_v46 = vpop.f32.mrb[11].mxu1 }
 0x6cc   : > { %v1290_v47 = vmul.f32 0.35355338, %v1281_v46 }
 0x6cd   : > { %v1293_v48 = vsel %vm682_vm3, -10000.0, %v1291_v43 }
 0x6ce   : > { %v1297_v49 = vsel %vm685_vm4, %v1293_v48, -inf  ;;  %v1292_v50 = vsel %vm681_vm5, -10000.0, %v1290_v47 }
 0x6cf   : > { %1298 = vmax.xlane.f32.xlu0 %v1297_v49  ;;  %v1294_v29 = vsel %vm685_vm4, %v1292_v50, -inf }
 0x6d0   : > { %1295 = vmax.xlane.f32.xlu1 %v1294_v29 }
 0x75c   : > { %v1299_v51 = vpop.xlane.xlu0 %1298 }
 0x75d   : > { %v1301_v52 = vsub.f32 %v1293_v48, %v1299_v51  ;;  %v1296_v53 = vpop.xlane.xlu1 %1295  ;;  %v1566_v51 = vld [vmem:[%s2993_s4 + $0x8] sm:$0xff] }
 0x75e   : > { %v1300_v54 = vsub.f32 %v1292_v50, %v1296_v53  ;;  %v1567_v53 = vld [vmem:[%s2993_s4 + $0x10] sm:$0xff] }
 0x75f   : > { %v1304_v55 = vmul.f32 1.442695, %v1301_v52 }
 0x760   : > { %v1302_v56 = vmul.f32 1.442695, %v1300_v54  ;;  %v1568_v54 = vld [vmem:[%s2993_s4 + $0x18] sm:$0xff] }
 0x761   : > { %2384 = vpow2.f32 %v1304_v55  ;;  %v2241_v55 = vpack.c.bf16 %v1568_v54, %v1567_v53 }
 0x762   : > { %2386 = vpow2.f32 %v1302_v56  ;;  %v1659_v56 = vld [vmem:[%s2995_s6] sm:$0xff] }
 0x76b   : > { %v2385_v57 = vpop.eup %2384 }
 0x76c   : > { %v2387_v44 = vpop.eup %2386  ;;  %v1309_v58 = vsel %vm685_vm4, %v2385_v57, 0.0 }
 0x76d   : > { %1310 = vadd.xlane.f32.xlu1 %v1309_v58  ;;  %v1306_v45 = vsel %vm685_vm4, %v2387_v44, 0.0 }
 0x76e   : > { %1307 = vadd.xlane.f32.xlu0 %v1306_v45  ;;  %v1662_v45 = vld [vmem:[%s2995_s6 + $0x18] sm:$0xff] }
 0x77e   : > { %1405 = vrot.lane.b32.xlu1 %v2823_v62, %s2535_s9 }
 0x782   : > { %1407 = vrot.lane.b32.xlu1 %v2821_v61, %s2535_s9 }
 0x784   : > { %2356 = vrot.lane.b32.xlu0 %v2795_v19, %s2534_s8  ;;  %v1435_v19 = vld [vmem:[#allocation2 + $0x60] sm:$0xff] }
 0x785   : > { %v2229_v10 = vpack.c.bf16 %v1436_v8, %v1435_v19  ;;  %v1555_v19 = vsub.s32 5, %v2724_v15  ;;  %v1561_v8 = vsub.s32 6, %v2724_v15 }
 0x786   : > { %1415 = vrot.lane.b32.xlu1 %v2109_v40, %s2536_s15 }
 0x787   : > { %v1556_v9 = vrot.slane %v2727_v17, %v1555_v19 }
 0x788   : > { %1413 = vrot.lane.b32.xlu0 %v1190_v41, %s2536_s15  ;;  %s314_s15 = sand.u32 1, %s2518_s25  }
 0x789   : > { %s2947_s28 = scalar_lea.sflag [#allocation4], %s314_s15 }
 0x7fa   : > { %v1311_v63 = vpop.xlane.xlu1 %1310 }
 0x7fb   : > { %2388 = vrcp.f32 %v1311_v63  ;;  %v1308_v0 = vpop.xlane.xlu0 %1307 }
 0x7fc   : > { %2390 = vrcp.f32 %v1308_v0  ;;  %v1663_v0 = vld [vmem:[%s2995_s6 + $0x20] sm:$0xff] }
 0x7fe   : > { %v1406_v21 = vpop.permute.xlu1 %1405 }
 0x7ff   : > { %v2357_v1 = vpop.permute.xlu0 %2356  ;;  %v1427_v26 = vsel %vm591_vm1, %v2819_v60, %v1406_v21 }
 0x800   : > { %v2359_v2 = vunpack.i.h.bf16 %v2357_v1  ;;  %v2358_v3 = vunpack.i.l.bf16 %v2357_v1  ;;  %v1664_v1 = vld [vmem:[%s2995_s6 + $0x28] sm:$0xff] }
 0x802   : > { %v2225_v4 = vpack.c.bf16 %v2359_v2, %v2358_v3  ;;  %v1408_v22 = vpop.permute.xlu1 %1407  ;;  %v2253_v2 = vpack.c.bf16 %v1664_v1, %v1663_v0 }
 0x803   : > { %v1414_v25 = vpop.permute.xlu0 %1413  ;;  %v1428_v28 = vsel %vm591_vm1, %v2817_v59, %v1408_v22 }
 0x804   : > { %2226 = vmatprep.subr.bf16.mxu0 %v2225_v4  ;;  %v1429_v31 = vsel %vm685_vm4, %v1427_v26, %v1414_v25  ;;  %v1665_v26 = vld [vmem:[%s2995_s6 + $0x30] sm:$0xff] }
 0x805   : > { %v2389_v6 = vpop.eup %2388  ;;  %2228 = vmatpush3.bf16.msra.mxu0 %v2225_v4 }
 0x806   : > { %v2391_v62 = vpop.eup %2390  ;;  %v1315_v61 = vmul.f32 %v2389_v6, %v2385_v57  ;;  %2230 = vmatprep.subr.bf16.mxu0 %v2229_v10  ;;  %v1416_v24 = vpop.permute.xlu1 %1415  ;;  %v1660_v57 = vld [vmem:[%s2995_s6 + $0x8] sm:$0xff] }
 0x807   : > { %v1313_v7 = vmul.f32 %v2391_v62, %v2387_v44  ;;  %v1430_v33 = vsel %vm685_vm4, %v1428_v28, %v1416_v24  ;;  %v1661_v44 = vld [vmem:[%s2995_s6 + $0x10] sm:$0xff]  ;;  %v2245_v58 = vpack.c.bf16 %v1660_v57, %v1659_v56 }
 0x808   : > { %v2249_v63 = vpack.c.bf16 %v1662_v45, %v1661_v44  ;;  %v1783_v44 = vsub.s32 7, %v2724_v15 }
 0x809   : > { %2121 = vmatprep.mubr.msk.f32.mxu0 %vm685_vm4, %v1313_v7 }
 0x80a   : > { %2122 = vmatmul.mubr.msk.f32.vlgmr.msra.gmra.mrb[8].mxu0 %vm685_vm4, %v1315_v61  ;;  %v1784_v45 = vrot.slane %v2727_v17, %v1783_v44 }
 0x80b   : > { %2232 = vmatpush3.bf16.msra.mxu0 %v2229_v10 }
 0x80c   : > { %2234 = vmatprep.subr.bf16.mxu0 %v2233_v13 }
 0x80f   : > { %2236 = vmatpush3.bf16.msra.mxu0 %v2233_v13  ;;  %v1562_v13 = vrot.slane %v2727_v17, %v1561_v8 }
 0x810   : > { %2246 = vmatprep.subr.bf16.mxu0 %v2245_v58 }
 0x8dd   : > { %v2123_v14 = vpop.f32.mrb[8].mxu0 }
 0x8de   : > { %1423 = vrot.lane.b32.xlu1 %v2123_v14, %s2537_s10  ;;  %v1394_v18 = vpop.f32.mrb[9].mxu0 }
 0x8df   : > { %1421 = vrot.lane.b32.xlu0 %v1394_v18, %s2537_s10  ;;  %s1913_s10 = sshll.u32 %s314_s15, 4 }
 0x8e0   : > { %s316_s16 = scalar_lea.vmem [#allocation7], %s1913_s10 }
 0x8e1   : > { %s1809_s13 = sshll.u32 %s316_s16, 4  ;;  %s2943_s13 = int_to_ptr.vmem [resolvable:$true] %s1809_s13 }
 0x8e2   : > { %s2456_s20 = scalar_lea.vmem %s2943_s13, 256  ;;  %p2463_p4 = scmp.lt.s32.totalorder %s2943_s13, %s2461_s22 }
 0x8e3   : > { %p2457_p12 = scmp.ne.s32.totalorder %s2943_s13, %s2456_s20  ;;  %p2464_p7 = scmp.lt.s32.totalorder %s2462_s23, %s2456_s20 }
 0x8e5   : > { %p2458_p2 = pnand %p2457_p12, %p3012_p1  ;;  %p2465_p8 = por %p2464_p7, %p2463_p4 }
 0x8e7   : > { %p2459_p3 = pneg %p2458_p2 }
 0x8e9   : > { %p2466_p11 = pnand %p2465_p8, %p2459_p3 }
 0x950   : > { %v1424_v27 = vpop.permute.xlu1 %1423 }
 0x951   : > { %v1422_v32 = vpop.permute.xlu0 %1421  ;;  %v1433_v30 = vsel %vm1431_vm6, %v1430_v33, %v1424_v27  ;;  %v1666_v27 = vld [vmem:[%s2995_s6 + $0x38] sm:$0xff] }
 0x952   : > { %v1432_v34 = vsel %vm1431_vm6, %v1429_v31, %v1422_v32  ;;  %v2257_v28 = vpack.c.bf16 %v1666_v27, %v1665_v26  ;;  %v1950_v31 = vld [vmem:[%s2994_s5] ss:$0 sm:$0xff] }
 0x953   : > { %2132 = vmatprep.mubr.msk.f32.mxu0 %vm341_vm0, %v1432_v34 }
 0x954   : > { %2133 = vmatmul.mubr.msk.f32.vlgmr.msra.gmra.mrb[10].mxu0 %vm341_vm0, %v1433_v30 }
 0x955   : > { %2248 = vmatpush3.bf16.msra.mxu0 %v2245_v58  ;;  %v332_v58 = vld [vmem:[#allocation5 + $0x8] sm:$0xff] }
 0x956   : > { %2250 = vmatprep.subr.bf16.mxu0 %v2249_v63  ;;  %v1790_v1 = vrot.slane %v332_v58, %v339_v16 }
 0x959   : > { %2252 = vmatpush3.bf16.msra.mxu0 %v2249_v63 }
 0x95a   : > { %2254 = vmatprep.subr.bf16.mxu0 %v2253_v2 }
 0x95d   : > { %2256 = vmatpush3.bf16.msra.mxu0 %v2253_v2 }
 0x95e   : > { %2258 = vmatprep.subr.bf16.mxu0 %v2257_v28 }
 0x961   : > { %2260 = vmatpush3.bf16.msra.mxu0 %v2257_v28 }
 0xa27   : > { %v2134_v60 = vpop.f32.mrb[10].mxu0 }
 0xa28   : > { %v1521_v36 = vadd.f32 %v2134_v60, %v1442_v23  ;;  %v1515_v20 = vpop.f32.mrb[11].mxu0  ;;  %v1669_v60 = vsub.s32 4, %v2724_v15 }
 0xa29   : > { %v1516_v37 = vadd.f32 %v1515_v20, %v1442_v23 }
 0xa2a   : > { %v1525_v59 = vadd.f32 %v1521_v36, %v2716_v12  ;;  %v1670_v36 = vrot.slane %v2727_v17, %v1669_v60 }
 0xa2b   : > { %v1524_v38 = vadd.f32 %v1516_v37, %v2710_v5  ;;  %v1565_v5 = vld [vmem:[%s2993_s4] sm:$0xff] }
 0xa2c   : > { %v1529_v39 = vsel %vm341_vm0, %v1525_v59, 0.0  ;;  %v2237_v52 = vpack.c.bf16 %v1566_v51, %v1565_v5 }
 0xa2d   : > { %1530 = vadd.xlane.f32.xlu1 %v1529_v39  ;;  %v1526_v40 = vsel %vm341_vm0, %v1524_v38, 0.0 }
 0xa2e   : > { %1527 = vadd.xlane.f32.xlu0 %v1526_v40  ;;  %2238 = vmatprep.subr.bf16.mxu1 %v2237_v52 }
 0xa2f   : > { %2240 = vmatpush3.bf16.msra.mxu1 %v2237_v52 }
 0xa30   : > { %2242 = vmatprep.subr.bf16.mxu1 %v2241_v55 }
 0xa33   : > { %2244 = vmatpush3.bf16.msra.mxu1 %v2241_v55 }
 0xaba   : > { %v1531_v41 = vpop.xlane.xlu1 %1530 }
 0xabb   : > { %v1534_v42 = vmul.f32 0.03125, %v1531_v41  ;;  %v1528_v43 = vpop.xlane.xlu0 %1527 }
 0xabc   : > { %v1533_v46 = vmul.f32 0.03125, %v1528_v43 }
 0xabd   : > { %v1536_v47 = vsub.f32 %v1525_v59, %v1534_v42 }
 0xabe   : > { %v1535_v48 = vsub.f32 %v1524_v38, %v1533_v46 }
 0xabf   : > { %v1538_v29 = vmul.f32 %v1536_v47, %v1536_v47 }
 0xac0   : > { %v1537_v49 = vmul.f32 %v1535_v48, %v1535_v48 }
 0xac1   : > { %v1542_v12 = vsel %vm341_vm0, %v1538_v29, 0.0 }
 0xac2   : > { %v1539_v50 = vsel %vm341_vm0, %v1537_v49, 0.0 }
 0xac3   : > { %1540 = vadd.xlane.f32.xlu0 %v1539_v50 }
 0xac7   : > { %1543 = vadd.xlane.f32.xlu0 %v1542_v12 }
 0xb50   : > { %v1541_v3 = vpop.xlane.xlu0 %1540 }
 0xb51   : > { %v1545_v4 = vmul.f32 0.03125, %v1541_v3 }
 0xb53   : > { %v1547_v6 = vadd.f32 1e-12, %v1545_v4 }
 0xb54   : > { %v1544_v62 = vpop.xlane.xlu0 %1543 }
 0xb55   : > { %2392 = vrsqrt.f32 %v1547_v6  ;;  %v1546_v7 = vmul.f32 0.03125, %v1544_v62 }
 0xb57   : > { %v1548_v61 = vadd.f32 1e-12, %v1546_v7 }
 0xb59   : > { %2394 = vrsqrt.f32 %v1548_v61 }
 0xb5f   : > { %v2393_v10 = vpop.eup %2392 }
 0xb60   : > { %v1551_v11 = vmul.f32 %v2393_v10, %v1535_v48 }
 0xb62   : > { %v1557_v14 = vmul.f32 %v1556_v9, %v1551_v11 }
 0xb63   : > { %v2395_v18 = vpop.eup %2394 }
 0xb64   : > { %v1552_v21 = vmul.f32 %v2395_v18, %v1536_v47  ;;  %v1563_v22 = vadd.f32 %v1562_v13, %v1557_v14 }
 0xb66   : > { %v1558_v24 = vmul.f32 %v1556_v9, %v1552_v21  ;;  %2143 = vmatprep.mubr.msk.f32.mxu1 %vm341_vm0, %v1563_v22 }
 0xb68   : > { %v1564_v25 = vadd.f32 %v1562_v13, %v1558_v24 }
 0xb6a   : > { %2144 = vmatmul.mubr.msk.f32.vlgmr.msra.gmra.mrb[12].mxu1 %vm341_vm0, %v1564_v25 }
 0xc3d   : > { %v2145_v32 = vpop.f32.mrb[12].mxu1 }
 0xc3e   : > { %v1654_v33 = vadd.f32 %v2145_v32, %v1950_v31  ;;  %v1648_v34 = vpop.f32.mrb[13].mxu1 }
 0xc3f   : > { %v1649_v30 = vadd.f32 %v1950_v31, %v1648_v34 }
 0xc40   : > { %v1658_v23 = vmax.f32 %v1654_v33, 0.0 }
 0xc41   : > { %v1657_v35 = vmax.f32 %v1649_v30, 0.0 }
 0xc43   : > { %2162 = vmatprep.mubr.msk.f32.mxu0 %vm1671_vm7, %v1657_v35 }
 0xc44   : > { %2163 = vmatmul.mubr.msk.f32.vlgmr.msra.gmra.mrb[12].mxu0 %vm1671_vm7, %v1658_v23 }
 0xd17   : > { %v2164_v20 = vpop.f32.mrb[12].mxu0 }
 0xd18   : > { %v1750_v37 = vadd.f32 %v2164_v20, %v1670_v36  ;;  %v1744_v59 = vpop.f32.mrb[13].mxu0 }
 0xd19   : > { %v1745_v38 = vadd.f32 %v1744_v59, %v1670_v36 }
 0xd1a   : > { %v1754_v39 = vadd.f32 %v1750_v37, %v1564_v25 }
 0xd1b   : > { %v1753_v40 = vadd.f32 %v1745_v38, %v1563_v22 }
 0xd1c   : > { %v1758_v41 = vsel %vm341_vm0, %v1754_v39, 0.0 }
 0xd1d   : > { %1759 = vadd.xlane.f32.xlu0 %v1758_v41  ;;  %v1755_v42 = vsel %vm341_vm0, %v1753_v40, 0.0 }
 0xd1e   : > { %1756 = vadd.xlane.f32.xlu1 %v1755_v42 }
 0xdaa   : > { %v1760_v43 = vpop.xlane.xlu0 %1759 }
 0xdab   : > { %v1762_v46 = vmul.f32 0.03125, %v1760_v43  ;;  %v1757_v47 = vpop.xlane.xlu1 %1756 }
 0xdac   : > { %v1761_v48 = vmul.f32 0.03125, %v1757_v47 }
 0xdad   : > { %v1764_v49 = vsub.f32 %v1754_v39, %v1762_v46 }
 0xdae   : > { %v1763_v50 = vsub.f32 %v1753_v40, %v1761_v48 }
 0xdaf   : > { %v1766_v29 = vmul.f32 %v1764_v49, %v1764_v49 }
 0xdb0   : > { %v1765_v12 = vmul.f32 %v1763_v50, %v1763_v50 }
 0xdb1   : > { %v1770_v5 = vsel %vm341_vm0, %v1766_v29, 0.0 }
 0xdb2   : > { %1771 = vadd.xlane.f32.xlu0 %v1770_v5  ;;  %v1767_v51 = vsel %vm341_vm0, %v1765_v12, 0.0 }
 0xdb3   : > { %1768 = vadd.xlane.f32.xlu1 %v1767_v51 }
 0xe3f   : > { %v1772_v52 = vpop.xlane.xlu0 %1771 }
 0xe40   : > { %v1774_v53 = vmul.f32 0.03125, %v1772_v52  ;;  %v1769_v54 = vpop.xlane.xlu1 %1768 }
 0xe41   : > { %v1773_v55 = vmul.f32 0.03125, %v1769_v54 }
 0xe42   : > { %v1776_v56 = vadd.f32 1e-12, %v1774_v53 }
 0xe43   : > { %v1775_v57 = vadd.f32 1e-12, %v1773_v55 }
 0xe44   : > { %2396 = vrsqrt.f32 %v1776_v56 }
 0xe45   : > { %2398 = vrsqrt.f32 %v1775_v57 }
 0xe4e   : > { %v2397_v63 = vpop.eup %2396 }
 0xe4f   : > { %v2399_v0 = vpop.eup %2398  ;;  %v1780_v2 = vmul.f32 %v2397_v63, %v1764_v49 }
 0xe50   : > { %v1779_v3 = vmul.f32 %v2399_v0, %v1763_v50 }
 0xe51   : > { %v1786_v4 = vmul.f32 %v1784_v45, %v1780_v2 }
 0xe52   : > { %v1785_v6 = vmul.f32 %v1784_v45, %v1779_v3 }
 0xe53   : > { %v1792_v62 = vadd.f32 %v1790_v1, %v1786_v4 }
 0xe54   : > { %v1791_v17 = vadd.f32 %v1790_v1, %v1785_v6 }
 0xe55   : > { %1794 = vst.msk [vmem:[%s316_s16 + $0x8] sm:$0xff] %vm341_vm0, %v1792_v62 }
 0xe56   : > { %1793 = vst.msk [vmem:[%s316_s16] sm:$0xff] %vm341_vm0, %v1791_v17 }
 0xe57   : > { %2469 = shalt.err (!%p2466_p11)
}
 0xe58   : > { %s2470_s29 = scalar_lea.hbm %s2941_s17, 256  ;;  %s2474_s10 = scalar_lea.hbm %s2996_s7, 512 }
 0xe59   : > { %p2471_p13 = scmp.ne.s32.totalorder %s2941_s17, %s2470_s29  ;;  %p2475_p6 = scmp.lt.u32.totalorder %s2941_s17, %s2996_s7 }
 0xe5a   : > { %p2476_p9 = scmp.lt.u32.totalorder %s2474_s10, %s2470_s29  ;;  %p2478_p12 = scmp.lt.u32.totalorder %s2470_s29, %s2941_s17 }
 0xe5b   : > { %p2472_p5 = pnand %p2471_p13, %p3012_p1 }
 0xe5c   : > { %p2477_p10 = por %p2476_p9, %p2475_p6 }
 0xe5d   : > { %p2473_p0 = pneg %p2472_p5 }
 0xe5e   : > { %p2479_p2 = por %p2478_p12, %p2477_p10 }
 0xe60   : > { %p2480_p3 = pnand %p2479_p2, %p2473_p0 }
 0xe62   : > { %2483 = shalt.err (!%p2480_p3)
}
 0xe63   : > { %s2539_s18 = smov 128  }
 0xe64   : > { %2269 = dma.vmem_to_hbm [thread:$0]  (%p3012_p1), %s2943_s13, 256, %s2941_s17, %s2947_s28, %s2539_s18, %s2539_s18, %s2535_s9  }
 0xe65 PF: > { %p2286_p4 = scmp.ge.s32.totalorder %s2526_s27, 2  ;;  %s1824_s14 = sand.u32 1, %s2514_s24  }
 0xe66   : > { %p3013_p7 = scmp.ne.s32.totalorder %s3002_s12, 0  ;;  %s1825_s20 = scalar_lea.sflag [#allocation4], %s1824_s14 }
 0xe68   : > { %p2279_p8 = pnand %p2286_p4, %p3013_p7 }
 0xe6a   : > { %2509 = dma.done.wait (!%p2279_p8), %s1825_s20, 256  }
 0xe6b   : > { %2511 = vsyncadd (!%p2279_p8), %s1825_s20, 4294967040  ;;  %s3014_s11 = sld [smem:[#allocation11_spill]]  ;;  %p19_p11 = scmp.ge.s32.totalorder %s2605_s30, 4  }
 0xe6c   : > { %s3015_s24 = smov %s2518_s25  ;;  %s3016_s25 = smov %s2522_s26 }
 0xe6d   : > { %s3018_s27 = smov %s2605_s30  ;;  %21 = sbr.rel (!%p19_p11) target bundleno = 5 (0x5), region = 98 }
 0xe71   : > { %s3017_s26 = smov %s3014_s11 }
 0xe74   :  { %1830 = vsyncpa [#allocation3], 1 }
 0xe75   :  { %1832 = vsyncpa [#allocation3 + $0x1], 1 }
 0xe76   :  { %1833 = vsyncpa [#allocation6], 1 }
 0xe77   :  { %1834 = vsyncpa [#allocation4], 1 }
 0xe78   :  { %1836 = vsyncpa [#allocation4 + $0x1], 1 }

</bundles_post_ra>
